<compile_context>
chip_gen: v7x
topology: tpu7x:2x2x1
jax: 0.10.0
libtpu: 0.0.40
codegen_flags: <defaults>
</compile_context>

<pallas_src>
import functools

import jax
import jax.numpy as jnp
from jax.experimental import pallas as pl
from jax.experimental.pallas import tpu as pltpu

D = 768  # hidden size fixed by the module (nn.Linear(768, 768))


def _round_up(x, m):
    return ((x + m - 1) // m) * m


def _proj_kernel(x_ref, w_ref, b_ref, o_ref):
    """One grid step = one tile of flattened (batch*token) rows.

    x_ref : (tile_m, D) bf16   subsampled CLIP hidden states (flattened rows)
    w_ref : (D, D)      bf16   projection weight, (in, out) layout (resident)
    b_ref : (1, D)      f32    projection bias (resident)
    o_ref : (tile_m, D) f32    projected (unshare) tokens
    """
    acc = jnp.dot(x_ref[...], w_ref[...], preferred_element_type=jnp.float32)
    o_ref[...] = (acc + b_ref[...]).astype(o_ref.dtype)


def prefix_token_forward(hidden, weight_t, bias, share_token, sub=2, tile_m=256):
    """hidden: (B, S, D) f32 CLIP last_hidden_state (post-CLIP, pre-projection)."""
    B, S, d = hidden.shape
    assert d == D
    P = share_token.shape[0]

    # --- token subsample (CLS + every `sub`-th patch token); the bf16 cast and
    # the flatten fuse with this gather in XLA (single pass over hidden). ---
    hidden_sub = jnp.concatenate([hidden[:, :1, :], hidden[:, 1::sub, :]], axis=1)
    S_sub = hidden_sub.shape[1]
    M = B * S_sub

    x = hidden_sub.reshape(M, D).astype(jnp.bfloat16)
    w = weight_t.astype(jnp.bfloat16)
    b2 = bias.astype(jnp.float32).reshape(1, D)

    # Row tile: multiple of 8 (sublane), capped at tile_m; a single tile when
    # M is small so the grid degenerates to one step.
    tm = min(tile_m, _round_up(M, 8))
    grid = (pl.cdiv(M, tm),)

    flops = 2 * M * D * D
    cost = pl.CostEstimate(
        flops=flops,
        transcendentals=0,
        bytes_accessed=x.size * 2 + w.size * 2 + b2.size * 4 + M * D * 4,
    )

    unshare_flat = pl.pallas_call(
        _proj_kernel,
        out_shape=jax.ShapeDtypeStruct((M, D), jnp.float32),
        grid_spec=pltpu.PrefetchScalarGridSpec(
            num_scalar_prefetch=0,
            grid=grid,
            in_specs=[
                pl.BlockSpec((tm, D), lambda i: (i, 0)),   # activations: M tiles
                pl.BlockSpec((D, D), lambda i: (0, 0)),    # weight (VMEM-resident)
                pl.BlockSpec((1, D), lambda i: (0, 0)),    # bias (VMEM-resident)
            ],
            out_specs=pl.BlockSpec((tm, D), lambda i: (i, 0)),
        ),
        compiler_params=pltpu.CompilerParams(
            # Independent M tiles -> shard across both TensorCores on v7x.
            dimension_semantics=("parallel",),
        ),
        cost_estimate=cost,
    )(x, w, b2)

    unshare = unshare_flat.reshape(B, S_sub, D)
    share = jnp.broadcast_to(share_token[None].astype(unshare.dtype), (B, P, D))
    # prefix_token = cat([share_token, unshare_token], dim=1) done in XLA so the
    # kernel store stays dense (avoids the split write at the unaligned row P).
    return jnp.concatenate([share, unshare], axis=1)


def init_params(key, share_token_num):
    kw, ks = jax.random.split(key)
    # xavier_uniform_ on a square (768, 768) weight: bound = sqrt(6 / (768+768)).
    bound = (6.0 / (D + D)) ** 0.5
    # torch Linear weight is (out, in); we store its transpose (in, out).  For a
    # square xavier-uniform init the distribution is identical.
    weight_t = jax.random.uniform(kw, (D, D), jnp.float32, minval=-bound, maxval=bound)
    bias = jnp.zeros((D,), jnp.float32)
    share_token = 0.02 * jax.random.normal(ks, (share_token_num, D), jnp.float32)
    return weight_t, bias, share_token


if __name__ == "__main__":
    key = jax.random.PRNGKey(0)
    k_params, k_hidden = jax.random.split(key)

    share_token_num = 4
    sub = 2
    B = 2
    S = 17  # 1 CLS token + 16 patch tokens (small stand-in for CLIP's 197)

    weight_t, bias, share_token = init_params(k_params, share_token_num)

    # TODO(synk): clip_processor + clip_model.vision_model are external
    # pretrained networks; their `last_hidden_state` output is simulated here.
    hidden = jax.random.normal(k_hidden, (B, S, D), jnp.float32)

    fwd = jax.jit(functools.partial(prefix_token_forward, sub=sub))
    out = jax.block_until_ready(fwd(hidden, weight_t, bias, share_token))

    # --- reference check in plain JAX (same bf16 operand rounding as the MXU) ---
    hidden_sub = jnp.concatenate([hidden[:, :1, :], hidden[:, 1::sub, :]], axis=1)
    S_sub = hidden_sub.shape[1]
    unshare_ref = (
        jnp.dot(
            hidden_sub.reshape(-1, D).astype(jnp.bfloat16),
            weight_t.astype(jnp.bfloat16),
            preferred_element_type=jnp.float32,
        ).reshape(B, S_sub, D)
        + bias
    )
    ref = jnp.concatenate(
        [jnp.broadcast_to(share_token[None], (B, share_token_num, D)), unshare_ref],
        axis=1,
    )
    assert out.shape == (B, share_token_num + S_sub, D), out.shape
    assert jnp.allclose(out, ref, atol=1e-3, rtol=1e-3), float(jnp.max(jnp.abs(out - ref)))

    print("KERNEL_OK")
</pallas_src>

<mosaic_0001>
module attributes {stable_mosaic.version = 11 : i64} {
  func.func @_proj_kernel(%arg0: i32, %arg1: memref<24x768xbf16, #tpu.memory_space<vmem>>, %arg2: memref<768x768xbf16, #tpu.memory_space<vmem>>, %arg3: memref<1x768xf32, #tpu.memory_space<vmem>>, %arg4: memref<24x768xf32, #tpu.memory_space<vmem>>) attributes {dimension_semantics = [#tpu.dimension_semantics<parallel>], iteration_bounds = array<i64: 1>, scalar_prefetch = 0 : i64, scratch_operands = 0 : i64, tpu.core_type = #tpu.core_type<tc>, window_params = [{transform_indices = @transform_0, window_bounds = array<i64: 24, 768>}, {pipeline_mode = #tpu.pipeline_mode<synchronous>, transform_indices = @transform_1, window_bounds = array<i64: 768, 768>}, {pipeline_mode = #tpu.pipeline_mode<synchronous>, transform_indices = @transform_2, window_bounds = array<i64: 1, 768>}, {transform_indices = @transform_3, window_bounds = array<i64: 24, 768>}]} {
    %c0 = arith.constant 0 : index
    %c0_0 = arith.constant 0 : index
    %0 = vector.load %arg1[%c0, %c0_0] : memref<24x768xbf16, #tpu.memory_space<vmem>>, vector<24x768xbf16>
    %c0_1 = arith.constant 0 : index
    %c0_2 = arith.constant 0 : index
    %1 = vector.load %arg2[%c0_1, %c0_2] : memref<768x768xbf16, #tpu.memory_space<vmem>>, vector<768x768xbf16>
    %cst = arith.constant dense<0.000000e+00> : vector<24x768xf32>
    %2 = tpu.matmul %0, %1, %cst {dimension_numbers = #tpu.dot_dimension_numbers<[1], [0], [0], [1], [0, 0, 1, 1], [], []>} : vector<24x768xbf16>, vector<768x768xbf16>, vector<24x768xf32> -> vector<24x768xf32>
    %c0_3 = arith.constant 0 : index
    %c0_4 = arith.constant 0 : index
    %3 = vector.load %arg3[%c0_3, %c0_4] : memref<1x768xf32, #tpu.memory_space<vmem>>, vector<1x768xf32>
    %4 = vector.broadcast %3 : vector<1x768xf32> to vector<24x768xf32>
    %5 = arith.addf %2, %4 : vector<24x768xf32>
    %c0_5 = arith.constant 0 : index
    %c0_6 = arith.constant 0 : index
    %6 = vector.load %arg4[%c0_5, %c0_6] : memref<24x768xf32, #tpu.memory_space<vmem>>, vector<24x768xf32>
    tpu.vector_store %arg4[%c0_5, %c0_6], %5 {strides = array<i32>} : memref<24x768xf32, #tpu.memory_space<vmem>>, vector<24x768xf32>,
    return
  }
  func.func @transform_0(%arg0: i32) -> (i32, i32) {
    %c0_i32 = arith.constant 0 : i32
    %c0_i32_0 = arith.constant 0 : i32
    return %arg0, %c0_i32 : i32, i32
  }
  func.func @transform_1(%arg0: i32) -> (i32, i32) {
    %c0_i32 = arith.constant 0 : i32
    %c0_i32_0 = arith.constant 0 : i32
    %c0_i32_1 = arith.constant 0 : i32
    return %c0_i32, %c0_i32_0 : i32, i32
  }
  func.func @transform_2(%arg0: i32) -> (i32, i32) {
    %c0_i32 = arith.constant 0 : i32
    %c0_i32_0 = arith.constant 0 : i32
    %c0_i32_1 = arith.constant 0 : i32
    return %c0_i32, %c0_i32_0 : i32, i32
  }
  func.func @transform_3(%arg0: i32) -> (i32, i32) {
    %c0_i32 = arith.constant 0 : i32
    %c0_i32_0 = arith.constant 0 : i32
    return %arg0, %c0_i32 : i32, i32
  }
}

</mosaic_0001>

<bundles_post_ra>
// kernel: prefix_token_forward.1
= control target key start
LH: loop header
LB: loop body
LE: loop exit
PB: predicated region body
PF: predicated region fallthrough
CT: control target
= control target key end

     0   :  { %s4213_s1 = inlined_call_operand.vmem [shape: bf16[768,768], index: 1, kind: input, shape index: {}]   ;;  %s4214_s0 = inlined_call_operand.vmem [shape: bf16[18,768], index: 0, kind: input, shape index: {}]   ;;  %s4215_s2 = inlined_call_operand.vmem [shape: f32[1,768], index: 2, kind: input, shape index: {}]   ;;  %s4216_s3 = inlined_call_operand.vmem [shape: f32[18,768], index: 3, kind: output, shape index: {}]  }
   0x1   :  { %v2709_v0 = vld [vmem:[%s4213_s1 + $0x4] ss:$24 sps:$4 sm:$0xff]   ;;  %v2713_v2 = vld [vmem:[%s4213_s1] ss:$24 sps:$4 sm:$0xff]   ;;  %v2715_v4 = vld [vmem:[%s4213_s1 + $0x34] ss:$24 sps:$4 sm:$0xff]  }
   0x2   :  { %v2711_v1 = vld [vmem:[%s4213_s1 + $0x304] ss:$24 sps:$4 sm:$0xff]   ;;  %1834 = vmatprep.subr.bf16.mxu1 %v2709_v0  ;;  %v2714_v3 = vld [vmem:[%s4213_s1 + $0x300] ss:$24 sps:$4 sm:$0xff]   ;;  %v2717_v5 = vld [vmem:[%s4213_s1 + $0x334] ss:$24 sps:$4 sm:$0xff]  }
   0x3   :  { %1885 = vmatprep.subr.bf16.mxu0 %v2711_v1  ;;  %1835 = vmatpush1.bf16.msra.mxu1 %v2713_v2  ;;  %v2719_v6 = vld [vmem:[%s4213_s1 + $0x30] ss:$24 sps:$4 sm:$0xff]   ;;  %v2721_v8 = vld [vmem:[%s4213_s1 + $0x64] ss:$24 sps:$4 sm:$0xff]   ;;  %v2725_v10 = vld [vmem:[%s4213_s1 + $0x60] ss:$24 sps:$4 sm:$0xff]  }
   0x4   :  { %1886 = vmatpush1.bf16.msra.mxu0 %v2714_v3  ;;  %1836 = vmatprep.subr.bf16.mxu1 %v2715_v4  ;;  %v2720_v7 = vld [vmem:[%s4213_s1 + $0x330] ss:$24 sps:$4 sm:$0xff]   ;;  %v2723_v9 = vld [vmem:[%s4213_s1 + $0x364] ss:$24 sps:$4 sm:$0xff]   ;;  %v2726_v11 = vld [vmem:[%s4213_s1 + $0x360] ss:$24 sps:$4 sm:$0xff]  }
   0x5   :  { %1887 = vmatprep.subr.bf16.mxu0 %v2717_v5  ;;  %v2727_v12 = vld [vmem:[%s4213_s1 + $0x94] ss:$24 sps:$4 sm:$0xff]   ;;  %v2731_v14 = vld [vmem:[%s4213_s1 + $0x90] ss:$24 sps:$4 sm:$0xff]   ;;  %v2733_v16 = vld [vmem:[%s4213_s1 + $0xc4] ss:$24 sps:$4 sm:$0xff]  }
   0x6   :  { %v2729_v13 = vld [vmem:[%s4213_s1 + $0x394] ss:$24 sps:$4 sm:$0xff]   ;;  %v2732_v15 = vld [vmem:[%s4213_s1 + $0x390] ss:$24 sps:$4 sm:$0xff]   ;;  %v2735_v17 = vld [vmem:[%s4213_s1 + $0x3c4] ss:$24 sps:$4 sm:$0xff]  }
   0x7   :  { %1837 = vmatpush1.bf16.msra.mxu1 %v2719_v6  ;;  %v2737_v18 = vld [vmem:[%s4213_s1 + $0xc0] ss:$24 sps:$4 sm:$0xff]   ;;  %v2739_v20 = vld [vmem:[%s4213_s1 + $0xf4] ss:$24 sps:$4 sm:$0xff]   ;;  %v2743_v22 = vld [vmem:[%s4213_s1 + $0xf0] ss:$24 sps:$4 sm:$0xff]  }
   0x8   :  { %1888 = vmatpush1.bf16.msra.mxu0 %v2720_v7  ;;  %1838 = vmatprep.subr.bf16.mxu1 %v2721_v8  ;;  %v2738_v19 = vld [vmem:[%s4213_s1 + $0x3c0] ss:$24 sps:$4 sm:$0xff]   ;;  %v2741_v21 = vld [vmem:[%s4213_s1 + $0x3f4] ss:$24 sps:$4 sm:$0xff]   ;;  %v2744_v23 = vld [vmem:[%s4213_s1 + $0x3f0] ss:$24 sps:$4 sm:$0xff]  }
   0x9   :  { %1889 = vmatprep.subr.bf16.mxu0 %v2723_v9  ;;  %v2745_v24 = vld [vmem:[%s4213_s1 + $0x124] ss:$24 sps:$4 sm:$0xff]   ;;  %v2749_v26 = vld [vmem:[%s4213_s1 + $0x120] ss:$24 sps:$4 sm:$0xff]   ;;  %v2751_v28 = vld [vmem:[%s4213_s1 + $0x154] ss:$24 sps:$4 sm:$0xff]  }
   0xa   :  { %v2747_v25 = vld [vmem:[%s4213_s1 + $0x424] ss:$24 sps:$4 sm:$0xff]   ;;  %v2750_v27 = vld [vmem:[%s4213_s1 + $0x420] ss:$24 sps:$4 sm:$0xff]   ;;  %v2753_v29 = vld [vmem:[%s4213_s1 + $0x454] ss:$24 sps:$4 sm:$0xff]  }
   0xb   :  { %1839 = vmatpush1.bf16.msra.mxu1 %v2725_v10  ;;  %v2755_v30 = vld [vmem:[%s4213_s1 + $0x150] ss:$24 sps:$4 sm:$0xff]   ;;  %v2757_v32 = vld [vmem:[%s4213_s1 + $0x184] ss:$24 sps:$4 sm:$0xff]   ;;  %v2761_v34 = vld [vmem:[%s4213_s1 + $0x180] ss:$24 sps:$4 sm:$0xff]  }
   0xc   :  { %1890 = vmatpush1.bf16.msra.mxu0 %v2726_v11  ;;  %1840 = vmatprep.subr.bf16.mxu1 %v2727_v12  ;;  %v2756_v31 = vld [vmem:[%s4213_s1 + $0x450] ss:$24 sps:$4 sm:$0xff]   ;;  %v2759_v33 = vld [vmem:[%s4213_s1 + $0x484] ss:$24 sps:$4 sm:$0xff]   ;;  %v2762_v35 = vld [vmem:[%s4213_s1 + $0x480] ss:$24 sps:$4 sm:$0xff]  }
   0xd   :  { %1891 = vmatprep.subr.bf16.mxu0 %v2729_v13  ;;  %v2763_v36 = vld [vmem:[%s4213_s1 + $0x1b4] ss:$24 sps:$4 sm:$0xff]   ;;  %v2767_v38 = vld [vmem:[%s4213_s1 + $0x1b0] ss:$24 sps:$4 sm:$0xff]   ;;  %v2769_v40 = vld [vmem:[%s4213_s1 + $0x1e4] ss:$24 sps:$4 sm:$0xff]  }
   0xe   :  { %v2765_v37 = vld [vmem:[%s4213_s1 + $0x4b4] ss:$24 sps:$4 sm:$0xff]   ;;  %v2768_v39 = vld [vmem:[%s4213_s1 + $0x4b0] ss:$24 sps:$4 sm:$0xff]   ;;  %v2771_v41 = vld [vmem:[%s4213_s1 + $0x4e4] ss:$24 sps:$4 sm:$0xff]  }
   0xf   :  { %1841 = vmatpush1.bf16.msra.mxu1 %v2731_v14  ;;  %v2773_v42 = vld [vmem:[%s4213_s1 + $0x1e0] ss:$24 sps:$4 sm:$0xff]   ;;  %v2775_v44 = vld [vmem:[%s4213_s1 + $0x214] ss:$24 sps:$4 sm:$0xff]   ;;  %v2779_v46 = vld [vmem:[%s4213_s1 + $0x210] ss:$24 sps:$4 sm:$0xff]  }
  0x10   :  { %1892 = vmatpush1.bf16.msra.mxu0 %v2732_v15  ;;  %1842 = vmatprep.subr.bf16.mxu1 %v2733_v16  ;;  %v2774_v43 = vld [vmem:[%s4213_s1 + $0x4e0] ss:$24 sps:$4 sm:$0xff]   ;;  %v2777_v45 = vld [vmem:[%s4213_s1 + $0x514] ss:$24 sps:$4 sm:$0xff]   ;;  %v2780_v47 = vld [vmem:[%s4213_s1 + $0x510] ss:$24 sps:$4 sm:$0xff]  }
  0x11   :  { %1893 = vmatprep.subr.bf16.mxu0 %v2735_v17  ;;  %v2781_v48 = vld [vmem:[%s4213_s1 + $0x244] ss:$24 sps:$4 sm:$0xff]   ;;  %v2785_v52 = vld [vmem:[%s4213_s1 + $0x240] ss:$24 sps:$4 sm:$0xff]   ;;  %v2787_v54 = vld [vmem:[%s4213_s1 + $0x274] ss:$24 sps:$4 sm:$0xff]  }
  0x12   :  { %v3329_v49 = vld [vmem:[%s4214_s0 + $0x4] ss:$24 sps:$4 sm:$0xff]   ;;  %v2786_v53 = vld [vmem:[%s4213_s1 + $0x540] ss:$24 sps:$4 sm:$0xff]   ;;  %v2789_v55 = vld [vmem:[%s4213_s1 + $0x574] ss:$24 sps:$4 sm:$0xff]  }
  0x13   :  { %1843 = vmatpush1.bf16.msra.mxu1 %v2737_v18  ;;  %v3334_v50 = vld [vmem:[%s4214_s0 + $0xc] ss:$24 sps:$4 sm:$0xff]   ;;  %1866 = vmatprep.mubr.bf16.mxu1 %v3329_v49  ;;  %v2791_v56 = vld [vmem:[%s4213_s1 + $0x270] ss:$24 sps:$4 sm:$0xff]   ;;  %v2797_v60 = vld [vmem:[%s4213_s1 + $0x2a0] ss:$24 sps:$4 sm:$0xff]  }
  0x14   :  { %1894 = vmatpush1.bf16.msra.mxu0 %v2738_v19  ;;  %1844 = vmatprep.subr.bf16.mxu1 %v2739_v20  ;;  %v2783_v51 = vld [vmem:[%s4213_s1 + $0x544] ss:$24 sps:$4 sm:$0xff]   ;;  %v2792_v57 = vld [vmem:[%s4213_s1 + $0x570] ss:$24 sps:$4 sm:$0xff]   ;;  %v2798_v61 = vld [vmem:[%s4213_s1 + $0x5a0] ss:$24 sps:$4 sm:$0xff]  }
  0x15   :  { %1895 = vmatprep.subr.bf16.mxu0 %v2741_v21  ;;  %1917 = vmatprep.mubr.bf16.mxu0 %v3334_v50  ;;  %v2793_v58 = vld [vmem:[%s4213_s1 + $0x2a4] ss:$24 sps:$4 sm:$0xff]   ;;  %v2799_v62 = vld [vmem:[%s4213_s1 + $0x2d4] ss:$24 sps:$4 sm:$0xff]   ;;  %v2803_v0 = vld [vmem:[%s4213_s1 + $0x2d0] ss:$24 sps:$4 sm:$0xff]  }
  0x16   :  { %v2795_v59 = vld [vmem:[%s4213_s1 + $0x5a4] ss:$24 sps:$4 sm:$0xff]   ;;  %v2801_v63 = vld [vmem:[%s4213_s1 + $0x5d4] ss:$24 sps:$4 sm:$0xff]   ;;  %v2804_v1 = vld [vmem:[%s4213_s1 + $0x5d0] ss:$24 sps:$4 sm:$0xff]  }
  0x17   :  { %1845 = vmatpush1.bf16.msra.mxu1 %v2743_v22  ;;  %v2812_v2 = vld [vmem:[%s4213_s1 + $0x604] ss:$24 sps:$4 sm:$0xff]   ;;  %v3392_v4 = vld [vmem:[%s4214_s0] ss:$24 sps:$4 sm:$0xff]   ;;  %v2819_v8 = vld [vmem:[%s4213_s1 + $0x634] ss:$24 sps:$4 sm:$0xff]  }
  0x18   :  { %1896 = vmatpush1.bf16.msra.mxu0 %v2744_v23  ;;  %1846 = vmatprep.subr.bf16.mxu1 %v2745_v24  ;;  %v2815_v3 = vld [vmem:[%s4213_s1 + $0xc] ss:$24 sps:$4 sm:$0xff]   ;;  %v2810_v5 = vld [vmem:[%s4213_s1 + $0x600] ss:$24 sps:$4 sm:$0xff]   ;;  %v2822_v9 = vld [vmem:[%s4213_s1 + $0x3c] ss:$24 sps:$4 sm:$0xff]  }
  0x19   :  { %1897 = vmatprep.subr.bf16.mxu0 %v2747_v25  ;;  %v2813_v6 = vld [vmem:[%s4213_s1 + $0x8] ss:$24 sps:$4 sm:$0xff]   ;;  %v2820_v11 = vld [vmem:[%s4213_s1 + $0x38] ss:$24 sps:$4 sm:$0xff]   ;;  %v2825_v12 = vld [vmem:[%s4213_s1 + $0x664] ss:$24 sps:$4 sm:$0xff]  }
  0x1a   :  { %v3403_v7 = vld [vmem:[%s4214_s0 + $0x8] ss:$24 sps:$4 sm:$0xff]   ;;  %v2828_v13 = vld [vmem:[%s4213_s1 + $0x6c] ss:$24 sps:$4 sm:$0xff]   ;;  %v2834_v17 = vld [vmem:[%s4213_s1 + $0x9c] ss:$24 sps:$4 sm:$0xff]  }
  0x1b   :  { %1847 = vmatpush1.bf16.msra.mxu1 %v2749_v26  ;;  %v2817_v10 = vld [vmem:[%s4213_s1 + $0x630] ss:$24 sps:$4 sm:$0xff]   ;;  %v2823_v14 = vld [vmem:[%s4213_s1 + $0x660] ss:$24 sps:$4 sm:$0xff]   ;;  %v2831_v16 = vld [vmem:[%s4213_s1 + $0x694] ss:$24 sps:$4 sm:$0xff]  }
  0x1c   :  { %1898 = vmatpush1.bf16.msra.mxu0 %v2750_v27  ;;  %1848 = vmatprep.subr.bf16.mxu1 %v2751_v28  ;;  %v2826_v15 = vld [vmem:[%s4213_s1 + $0x68] ss:$24 sps:$4 sm:$0xff]   ;;  %v2832_v19 = vld [vmem:[%s4213_s1 + $0x98] ss:$24 sps:$4 sm:$0xff]   ;;  %v2837_v20 = vld [vmem:[%s4213_s1 + $0x6c4] ss:$24 sps:$4 sm:$0xff]  }
  0x1d   :  { %1899 = vmatprep.subr.bf16.mxu0 %v2753_v29  ;;  %v2829_v18 = vld [vmem:[%s4213_s1 + $0x690] ss:$24 sps:$4 sm:$0xff]   ;;  %v2840_v21 = vld [vmem:[%s4213_s1 + $0xcc] ss:$24 sps:$4 sm:$0xff]   ;;  %v2835_v22 = vld [vmem:[%s4213_s1 + $0x6c0] ss:$24 sps:$4 sm:$0xff]  }
  0x1e   :  { %v2838_v23 = vld [vmem:[%s4213_s1 + $0xc8] ss:$24 sps:$4 sm:$0xff]   ;;  %v2843_v24 = vld [vmem:[%s4213_s1 + $0x6f4] ss:$24 sps:$4 sm:$0xff]   ;;  %v21_v28 = vld [vmem:[%s4214_s0 + $0x38] sm:$0xff] }
  0x1f   :  { %1849 = vmatpush1.bf16.msra.mxu1 %v2755_v30  ;;  %v2846_v25 = vld [vmem:[%s4213_s1 + $0xfc] ss:$24 sps:$4 sm:$0xff]   ;;  %v2841_v30 = vld [vmem:[%s4213_s1 + $0x6f0] ss:$24 sps:$4 sm:$0xff]  }
  0x20   :  { %1900 = vmatpush1.bf16.msra.mxu0 %v2756_v31  ;;  %1850 = vmatprep.subr.bf16.mxu1 %v2757_v32  ;;  %v20_v26 = vld [vmem:[%s4214_s0 + $0x30] sm:$0xff]  ;;  %v3477_v32 = vcombine.high %v21_v28, %v21_v28 }
  0x21   :  { %1901 = vmatprep.subr.bf16.mxu0 %v2759_v33  ;;  %v3464_v27 = vcombine.high %v20_v26, %v20_v26  ;;  %v3469_v29 = vcombine.low %v20_v26, %v20_v26  ;;  %v2844_v31 = vld [vmem:[%s4213_s1 + $0xf8] ss:$24 sps:$4 sm:$0xff]   ;;  %v3479_v33 = vcombine.low %v21_v28, %v21_v28  ;;  %v2930_v26 = vld [vmem:[%s4213_s1 + $0x36c] ss:$24 sps:$4 sm:$0xff]  }
  0x22   :  { %v2933_v28 = vld [vmem:[%s4213_s1 + $0x74] ss:$24 sps:$4 sm:$0xff]  }
  0x23   :  { %1851 = vmatpush1.bf16.msra.mxu1 %v2761_v34  ;;  %v2849_v34 = vld [vmem:[%s4213_s1 + $0x724] ss:$24 sps:$4 sm:$0xff]  }
  0x24   :  { %1902 = vmatpush1.bf16.msra.mxu0 %v2762_v35  ;;  %1852 = vmatprep.subr.bf16.mxu1 %v2763_v36  ;;  %v2852_v35 = vld [vmem:[%s4213_s1 + $0x12c] ss:$24 sps:$4 sm:$0xff]   ;;  %v2847_v36 = vld [vmem:[%s4213_s1 + $0x720] ss:$24 sps:$4 sm:$0xff]  }
  0x25   :  { %1903 = vmatprep.subr.bf16.mxu0 %v2765_v37  ;;  %v2850_v37 = vld [vmem:[%s4213_s1 + $0x128] ss:$24 sps:$4 sm:$0xff]  }
  0x27   :  { %1853 = vmatpush1.bf16.msra.mxu1 %v2767_v38  ;;  %v2855_v38 = vld [vmem:[%s4213_s1 + $0x754] ss:$24 sps:$4 sm:$0xff]  }
  0x28   :  { %1904 = vmatpush1.bf16.msra.mxu0 %v2768_v39  ;;  %1854 = vmatprep.subr.bf16.mxu1 %v2769_v40  ;;  %v2858_v39 = vld [vmem:[%s4213_s1 + $0x15c] ss:$24 sps:$4 sm:$0xff]  }
  0x29   :  { %1905 = vmatprep.subr.bf16.mxu0 %v2771_v41  ;;  %v3506_v40 = vld [vmem:[%s4214_s0 + $0x14] ss:$24 sps:$4 sm:$0xff]   ;;  %v2853_v41 = vld [vmem:[%s4213_s1 + $0x750] ss:$24 sps:$4 sm:$0xff]  }
  0x2b   :  { %1855 = vmatpush1.bf16.msra.mxu1 %v2773_v42  ;;  %v2856_v42 = vld [vmem:[%s4213_s1 + $0x158] ss:$24 sps:$4 sm:$0xff]  }
  0x2c   :  { %1906 = vmatpush1.bf16.msra.mxu0 %v2774_v43  ;;  %1856 = vmatprep.subr.bf16.mxu1 %v2775_v44  ;;  %v2861_v43 = vld [vmem:[%s4213_s1 + $0x784] ss:$24 sps:$4 sm:$0xff]  }
  0x2d   :  { %1907 = vmatprep.subr.bf16.mxu0 %v2777_v45  ;;  %v2864_v44 = vld [vmem:[%s4213_s1 + $0x18c] ss:$24 sps:$4 sm:$0xff]   ;;  %v2859_v45 = vld [vmem:[%s4213_s1 + $0x780] ss:$24 sps:$4 sm:$0xff]  }
  0x2f   :  { %1857 = vmatpush1.bf16.msra.mxu1 %v2779_v46  ;;  %v2862_v46 = vld [vmem:[%s4213_s1 + $0x188] ss:$24 sps:$4 sm:$0xff]  }
  0x30   :  { %1908 = vmatpush1.bf16.msra.mxu0 %v2780_v47  ;;  %1858 = vmatprep.subr.bf16.mxu1 %v2781_v48  ;;  %v2867_v47 = vld [vmem:[%s4213_s1 + $0x7b4] ss:$24 sps:$4 sm:$0xff]  }
  0x31   :  { %1909 = vmatprep.subr.bf16.mxu0 %v2783_v51  ;;  %v2870_v48 = vld [vmem:[%s4213_s1 + $0x1bc] ss:$24 sps:$4 sm:$0xff]   ;;  %v2865_v51 = vld [vmem:[%s4213_s1 + $0x7b0] ss:$24 sps:$4 sm:$0xff]  }
  0x33   :  { %1859 = vmatpush1.bf16.msra.mxu1 %v2785_v52  ;;  %v2868_v52 = vld [vmem:[%s4213_s1 + $0x1b8] ss:$24 sps:$4 sm:$0xff]  }
  0x34   :  { %1910 = vmatpush1.bf16.msra.mxu0 %v2786_v53  ;;  %1860 = vmatprep.subr.bf16.mxu1 %v2787_v54  ;;  %v2873_v53 = vld [vmem:[%s4213_s1 + $0x7e4] ss:$24 sps:$4 sm:$0xff]  }
  0x35   :  { %1911 = vmatprep.subr.bf16.mxu0 %v2789_v55  ;;  %v2876_v54 = vld [vmem:[%s4213_s1 + $0x1ec] ss:$24 sps:$4 sm:$0xff]   ;;  %v2871_v55 = vld [vmem:[%s4213_s1 + $0x7e0] ss:$24 sps:$4 sm:$0xff]  }
  0x37   :  { %1861 = vmatpush1.bf16.msra.mxu1 %v2791_v56  ;;  %v2874_v56 = vld [vmem:[%s4213_s1 + $0x1e8] ss:$24 sps:$4 sm:$0xff]  }
  0x38   :  { %1912 = vmatpush1.bf16.msra.mxu0 %v2792_v57  ;;  %1862 = vmatprep.subr.bf16.mxu1 %v2793_v58  ;;  %v2879_v57 = vld [vmem:[%s4213_s1 + $0x814] ss:$24 sps:$4 sm:$0xff]  }
  0x39   :  { %1913 = vmatprep.subr.bf16.mxu0 %v2795_v59  ;;  %v2882_v58 = vld [vmem:[%s4213_s1 + $0x21c] ss:$24 sps:$4 sm:$0xff]   ;;  %v2877_v59 = vld [vmem:[%s4213_s1 + $0x810] ss:$24 sps:$4 sm:$0xff]  }
  0x3b   :  { %1863 = vmatpush1.bf16.msra.mxu1 %v2797_v60  ;;  %v2880_v60 = vld [vmem:[%s4213_s1 + $0x218] ss:$24 sps:$4 sm:$0xff]  }
  0x3c   :  { %1914 = vmatpush1.bf16.msra.mxu0 %v2798_v61  ;;  %1864 = vmatprep.subr.bf16.mxu1 %v2799_v62  ;;  %v2885_v61 = vld [vmem:[%s4213_s1 + $0x844] ss:$24 sps:$4 sm:$0xff]  }
  0x3d   :  { %1915 = vmatprep.subr.bf16.mxu0 %v2801_v63  ;;  %v2888_v62 = vld [vmem:[%s4213_s1 + $0x24c] ss:$24 sps:$4 sm:$0xff]   ;;  %v2883_v63 = vld [vmem:[%s4213_s1 + $0x840] ss:$24 sps:$4 sm:$0xff]  }
  0x3f   :  { %1865 = vmatpush1.bf16.msra.mxu1 %v2803_v0  ;;  %v2886_v0 = vld [vmem:[%s4213_s1 + $0x248] ss:$24 sps:$4 sm:$0xff]  }
  0x40   :  { %1916 = vmatpush1.bf16.msra.mxu0 %v2804_v1  ;;  %1987 = vmatprep.subr.bf16.mxu1 %v2815_v3  ;;  %v2891_v1 = vld [vmem:[%s4213_s1 + $0x874] ss:$24 sps:$4 sm:$0xff]   ;;  %v2889_v3 = vld [vmem:[%s4213_s1 + $0x870] ss:$24 sps:$4 sm:$0xff]  }
  0x41   :  { %1936 = vmatprep.subr.bf16.mxu0 %v2812_v2  ;;  %v2894_v2 = vld [vmem:[%s4213_s1 + $0x27c] ss:$24 sps:$4 sm:$0xff]  }
  0x42   :  { %1867 = vmatmul.mubr.bf16.vlgmr.msra.gmra.mrb[0].mxu1 %v3392_v4 }
  0x43   :  { %1918 = vmatmul.mubr.bf16.vlgmr.msra.gmra.mrb[0].mxu0 %v3403_v7  ;;  %1988 = vmatpush1.bf16.msra.mxu1 %v2813_v6  ;;  %v2901_v6 = vld [vmem:[%s4213_s1 + $0x8a4] ss:$24 sps:$4 sm:$0xff]  }
  0x44   :  { %1937 = vmatpush1.bf16.msra.mxu0 %v2810_v5  ;;  %1989 = vmatprep.subr.bf16.mxu1 %v2822_v9  ;;  %v2892_v5 = vld [vmem:[%s4213_s1 + $0x278] ss:$24 sps:$4 sm:$0xff]  }
  0x45   :  { %1938 = vmatprep.subr.bf16.mxu0 %v2819_v8  ;;  %1876 = vmatprep.mubr.bf16.mxu1 %v3464_v27  ;;  %v2904_v8 = vld [vmem:[%s4213_s1 + $0x2ac] ss:$24 sps:$4 sm:$0xff]   ;;  %v2899_v9 = vld [vmem:[%s4213_s1 + $0x8a0] ss:$24 sps:$4 sm:$0xff]  }
  0x46   :  { %1927 = vmatprep.mubr.bf16.mxu0 %v3477_v32 }
  0x47   :  { %1990 = vmatpush1.bf16.msra.mxu1 %v2820_v11  ;;  %v2907_v11 = vld [vmem:[%s4213_s1 + $0x8d4] ss:$24 sps:$4 sm:$0xff]  }
  0x48   :  { %1939 = vmatpush1.bf16.msra.mxu0 %v2817_v10  ;;  %1991 = vmatprep.subr.bf16.mxu1 %v2828_v13  ;;  %v2902_v10 = vld [vmem:[%s4213_s1 + $0x2a8] ss:$24 sps:$4 sm:$0xff]  }
  0x49   :  { %1940 = vmatprep.subr.bf16.mxu0 %v2825_v12  ;;  %v2910_v12 = vld [vmem:[%s4213_s1 + $0x2dc] ss:$24 sps:$4 sm:$0xff]   ;;  %v2905_v13 = vld [vmem:[%s4213_s1 + $0x8d0] ss:$24 sps:$4 sm:$0xff]  }
  0x4a   :  { %1877 = vmatmul.mubr.bf16.gmra.mrb[4].mxu1 %v3469_v29 }
  0x4b   :  { %1992 = vmatpush1.bf16.msra.mxu1 %v2826_v15  ;;  %1928 = vmatmul.mubr.bf16.gmra.mrb[4].mxu0 %v3479_v33  ;;  %v2916_v15 = vld [vmem:[%s4213_s1 + $0x30c] ss:$24 sps:$4 sm:$0xff]  }
  0x4c   :  { %1941 = vmatpush1.bf16.msra.mxu0 %v2823_v14  ;;  %1993 = vmatprep.subr.bf16.mxu1 %v2834_v17  ;;  %v2908_v14 = vld [vmem:[%s4213_s1 + $0x2d8] ss:$24 sps:$4 sm:$0xff]  }
  0x4d   :  { %1942 = vmatprep.subr.bf16.mxu0 %v2831_v16  ;;  %2019 = vmatprep.mubr.bf16.mxu1 %v3329_v49  ;;  %v2919_v16 = vld [vmem:[%s4213_s1 + $0x14] ss:$24 sps:$4 sm:$0xff]   ;;  %v3621_v17 = vld [vmem:[%s4214_s0 + $0x10] ss:$24 sps:$4 sm:$0xff]  }
  0x4e   :  { %1968 = vmatprep.mubr.bf16.mxu0 %v3506_v40 }
  0x4f   :  { %1994 = vmatpush1.bf16.msra.mxu1 %v2832_v19  ;;  %v22_v19 = vld [vmem:[%s4214_s0 + $0x40] sm:$0xff] }
  0x50   :  { %1943 = vmatpush1.bf16.msra.mxu0 %v2829_v18  ;;  %1995 = vmatprep.subr.bf16.mxu1 %v2840_v21  ;;  %v2914_v18 = vld [vmem:[%s4213_s1 + $0x308] ss:$24 sps:$4 sm:$0xff]   ;;  %v2922_v21 = vld [vmem:[%s4213_s1 + $0x33c] ss:$24 sps:$4 sm:$0xff]  }
  0x51   :  { %1944 = vmatprep.subr.bf16.mxu0 %v2837_v20  ;;  %v2917_v20 = vld [vmem:[%s4213_s1 + $0x10] ss:$24 sps:$4 sm:$0xff]  }
  0x53   :  { %1996 = vmatpush1.bf16.msra.mxu1 %v2838_v23  ;;  %v3638_v23 = vcombine.high %v22_v19, %v22_v19 }
  0x54   :  { %1945 = vmatpush1.bf16.msra.mxu0 %v2835_v22  ;;  %1997 = vmatprep.subr.bf16.mxu1 %v2846_v25  ;;  %v2925_v22 = vld [vmem:[%s4213_s1 + $0x44] ss:$24 sps:$4 sm:$0xff]   ;;  %v2923_v25 = vld [vmem:[%s4213_s1 + $0x40] ss:$24 sps:$4 sm:$0xff]  }
  0x55   :  { %1946 = vmatprep.subr.bf16.mxu0 %v2843_v24  ;;  %v2920_v24 = vld [vmem:[%s4213_s1 + $0x338] ss:$24 sps:$4 sm:$0xff]  }
  0x57   :  { %1998 = vmatpush1.bf16.msra.mxu1 %v2844_v31  ;;  %v2928_v31 = vld [vmem:[%s4213_s1 + $0x368] ss:$24 sps:$4 sm:$0xff]  }
  0x58   :  { %1947 = vmatpush1.bf16.msra.mxu0 %v2841_v30  ;;  %1999 = vmatprep.subr.bf16.mxu1 %v2852_v35  ;;  %v3656_v30 = vcombine.low %v22_v19, %v22_v19  ;;  %v2936_v35 = vld [vmem:[%s4213_s1 + $0x39c] ss:$24 sps:$4 sm:$0xff]   ;;  %v3002_v19 = vld [vmem:[%s4213_s1 + $0x5ac] ss:$24 sps:$4 sm:$0xff]  }
  0x59   :  { %1948 = vmatprep.subr.bf16.mxu0 %v2849_v34  ;;  %v2931_v34 = vld [vmem:[%s4213_s1 + $0x70] ss:$24 sps:$4 sm:$0xff]  }
  0x5b   :  { %2000 = vmatpush1.bf16.msra.mxu1 %v2850_v37  ;;  %v2934_v37 = vld [vmem:[%s4213_s1 + $0x398] ss:$24 sps:$4 sm:$0xff]  }
  0x5c   :  { %1949 = vmatpush1.bf16.msra.mxu0 %v2847_v36  ;;  %2001 = vmatprep.subr.bf16.mxu1 %v2858_v39  ;;  %v2939_v36 = vld [vmem:[%s4213_s1 + $0xa4] ss:$24 sps:$4 sm:$0xff]  }
  0x5d   :  { %1950 = vmatprep.subr.bf16.mxu0 %v2855_v38  ;;  %v2937_v38 = vld [vmem:[%s4213_s1 + $0xa0] ss:$24 sps:$4 sm:$0xff]   ;;  %v2942_v39 = vld [vmem:[%s4213_s1 + $0x3cc] ss:$24 sps:$4 sm:$0xff]  }
  0x5f   :  { %2002 = vmatpush1.bf16.msra.mxu1 %v2856_v42  ;;  %v2940_v42 = vld [vmem:[%s4213_s1 + $0x3c8] ss:$24 sps:$4 sm:$0xff]  }
  0x60   :  { %1951 = vmatpush1.bf16.msra.mxu0 %v2853_v41  ;;  %2003 = vmatprep.subr.bf16.mxu1 %v2864_v44  ;;  %v2945_v41 = vld [vmem:[%s4213_s1 + $0xd4] ss:$24 sps:$4 sm:$0xff]  }
  0x61   :  { %1952 = vmatprep.subr.bf16.mxu0 %v2861_v43  ;;  %v2943_v43 = vld [vmem:[%s4213_s1 + $0xd0] ss:$24 sps:$4 sm:$0xff]   ;;  %v2948_v44 = vld [vmem:[%s4213_s1 + $0x3fc] ss:$24 sps:$4 sm:$0xff]  }
  0x63   :  { %2004 = vmatpush1.bf16.msra.mxu1 %v2862_v46  ;;  %v2954_v46 = vld [vmem:[%s4213_s1 + $0x42c] ss:$24 sps:$4 sm:$0xff]  }
  0x64   :  { %1953 = vmatpush1.bf16.msra.mxu0 %v2859_v45  ;;  %2005 = vmatprep.subr.bf16.mxu1 %v2870_v48  ;;  %v2949_v45 = vld [vmem:[%s4213_s1 + $0x100] ss:$24 sps:$4 sm:$0xff]  }
  0x65   :  { %1954 = vmatprep.subr.bf16.mxu0 %v2867_v47  ;;  %v2957_v47 = vld [vmem:[%s4213_s1 + $0x134] ss:$24 sps:$4 sm:$0xff]   ;;  %v2952_v48 = vld [vmem:[%s4213_s1 + $0x428] ss:$24 sps:$4 sm:$0xff]  }
  0x67   :  { %2006 = vmatpush1.bf16.msra.mxu1 %v2868_v52  ;;  %v2960_v52 = vld [vmem:[%s4213_s1 + $0x45c] ss:$24 sps:$4 sm:$0xff]  }
  0x68   :  { %1955 = vmatpush1.bf16.msra.mxu0 %v2865_v51  ;;  %2007 = vmatprep.subr.bf16.mxu1 %v2876_v54  ;;  %v2955_v51 = vld [vmem:[%s4213_s1 + $0x130] ss:$24 sps:$4 sm:$0xff]  }
  0x69   :  { %1956 = vmatprep.subr.bf16.mxu0 %v2873_v53  ;;  %v2963_v53 = vld [vmem:[%s4213_s1 + $0x164] ss:$24 sps:$4 sm:$0xff]   ;;  %v2958_v54 = vld [vmem:[%s4213_s1 + $0x458] ss:$24 sps:$4 sm:$0xff]  }
  0x6b   :  { %2008 = vmatpush1.bf16.msra.mxu1 %v2874_v56  ;;  %v2966_v56 = vld [vmem:[%s4213_s1 + $0x48c] ss:$24 sps:$4 sm:$0xff]  }
  0x6c   :  { %1957 = vmatpush1.bf16.msra.mxu0 %v2871_v55  ;;  %2009 = vmatprep.subr.bf16.mxu1 %v2882_v58  ;;  %v2961_v55 = vld [vmem:[%s4213_s1 + $0x160] ss:$24 sps:$4 sm:$0xff]  }
  0x6d   :  { %1958 = vmatprep.subr.bf16.mxu0 %v2879_v57  ;;  %v2969_v57 = vld [vmem:[%s4213_s1 + $0x194] ss:$24 sps:$4 sm:$0xff]   ;;  %v2964_v58 = vld [vmem:[%s4213_s1 + $0x488] ss:$24 sps:$4 sm:$0xff]  }
  0x6f   :  { %2010 = vmatpush1.bf16.msra.mxu1 %v2880_v60  ;;  %v2972_v60 = vld [vmem:[%s4213_s1 + $0x4bc] ss:$24 sps:$4 sm:$0xff]  }
  0x70   :  { %1959 = vmatpush1.bf16.msra.mxu0 %v2877_v59  ;;  %2011 = vmatprep.subr.bf16.mxu1 %v2888_v62  ;;  %v2967_v59 = vld [vmem:[%s4213_s1 + $0x190] ss:$24 sps:$4 sm:$0xff]  }
  0x71   :  { %1960 = vmatprep.subr.bf16.mxu0 %v2885_v61  ;;  %v2975_v61 = vld [vmem:[%s4213_s1 + $0x1c4] ss:$24 sps:$4 sm:$0xff]   ;;  %v2970_v62 = vld [vmem:[%s4213_s1 + $0x4b8] ss:$24 sps:$4 sm:$0xff]  }
  0x73   :  { %2012 = vmatpush1.bf16.msra.mxu1 %v2886_v0  ;;  %v2978_v0 = vld [vmem:[%s4213_s1 + $0x4ec] ss:$24 sps:$4 sm:$0xff]  }
  0x74   :  { %1961 = vmatpush1.bf16.msra.mxu0 %v2883_v63  ;;  %2013 = vmatprep.subr.bf16.mxu1 %v2894_v2  ;;  %v2973_v63 = vld [vmem:[%s4213_s1 + $0x1c0] ss:$24 sps:$4 sm:$0xff]  }
  0x75   :  { %1962 = vmatprep.subr.bf16.mxu0 %v2891_v1  ;;  %v2981_v1 = vld [vmem:[%s4213_s1 + $0x1f4] ss:$24 sps:$4 sm:$0xff]   ;;  %v2976_v2 = vld [vmem:[%s4213_s1 + $0x4e8] ss:$24 sps:$4 sm:$0xff]  }
  0x77   :  { %2014 = vmatpush1.bf16.msra.mxu1 %v2892_v5  ;;  %v2984_v5 = vld [vmem:[%s4213_s1 + $0x51c] ss:$24 sps:$4 sm:$0xff]  }
  0x78   :  { %1963 = vmatpush1.bf16.msra.mxu0 %v2889_v3  ;;  %2015 = vmatprep.subr.bf16.mxu1 %v2904_v8  ;;  %v2979_v3 = vld [vmem:[%s4213_s1 + $0x1f0] ss:$24 sps:$4 sm:$0xff]  }
  0x79   :  { %1964 = vmatprep.subr.bf16.mxu0 %v2901_v6  ;;  %v2987_v6 = vld [vmem:[%s4213_s1 + $0x224] ss:$24 sps:$4 sm:$0xff]   ;;  %v2982_v8 = vld [vmem:[%s4213_s1 + $0x518] ss:$24 sps:$4 sm:$0xff]  }
  0x7b   :  { %2016 = vmatpush1.bf16.msra.mxu1 %v2902_v10  ;;  %v2990_v10 = vld [vmem:[%s4213_s1 + $0x54c] ss:$24 sps:$4 sm:$0xff]  }
  0x7c   :  { %1965 = vmatpush1.bf16.msra.mxu0 %v2899_v9  ;;  %2017 = vmatprep.subr.bf16.mxu1 %v2910_v12  ;;  %v2985_v9 = vld [vmem:[%s4213_s1 + $0x220] ss:$24 sps:$4 sm:$0xff]  }
  0x7d   :  { %1966 = vmatprep.subr.bf16.mxu0 %v2907_v11  ;;  %v2993_v11 = vld [vmem:[%s4213_s1 + $0x254] ss:$24 sps:$4 sm:$0xff]   ;;  %v2988_v12 = vld [vmem:[%s4213_s1 + $0x548] ss:$24 sps:$4 sm:$0xff]  }
  0x7f   :  { %2018 = vmatpush1.bf16.msra.mxu1 %v2908_v14  ;;  %v2996_v14 = vld [vmem:[%s4213_s1 + $0x57c] ss:$24 sps:$4 sm:$0xff]  }
  0x80   :  { %1967 = vmatpush1.bf16.msra.mxu0 %v2905_v13  ;;  %2038 = vmatprep.subr.bf16.mxu1 %v2916_v15  ;;  %v2991_v13 = vld [vmem:[%s4213_s1 + $0x250] ss:$24 sps:$4 sm:$0xff]   ;;  %v2999_v15 = vld [vmem:[%s4213_s1 + $0x284] ss:$24 sps:$4 sm:$0xff]  }
  0x81   :  { %2140 = vmatprep.subr.bf16.mxu0 %v2919_v16  ;;  %v2994_v16 = vld [vmem:[%s4213_s1 + $0x578] ss:$24 sps:$4 sm:$0xff]  }
  0x82   :  { %2020 = vmatmul.mubr.bf16.vlgmr.msra.gmra.mrb[8].mxu1 %v3392_v4 }
  0x83   :  { %1969 = vmatmul.mubr.bf16.vlgmr.msra.gmra.mrb[0].mxu0 %v3621_v17  ;;  %2039 = vmatpush1.bf16.msra.mxu1 %v2914_v18  ;;  %v2997_v18 = vld [vmem:[%s4213_s1 + $0x280] ss:$24 sps:$4 sm:$0xff]  }
  0x84   :  { %2141 = vmatpush1.bf16.msra.mxu0 %v2917_v20  ;;  %2040 = vmatprep.subr.bf16.mxu1 %v2922_v21  ;;  %v3005_v20 = vld [vmem:[%s4213_s1 + $0x2b4] ss:$24 sps:$4 sm:$0xff]   ;;  %v3000_v21 = vld [vmem:[%s4213_s1 + $0x5a8] ss:$24 sps:$4 sm:$0xff]  }
  0x85   :  { %2142 = vmatprep.subr.bf16.mxu0 %v2925_v22  ;;  %1978 = vmatprep.mubr.bf16.mxu0 %v3638_v23  ;;  %v3003_v22 = vld [vmem:[%s4213_s1 + $0x2b0] ss:$24 sps:$4 sm:$0xff]  }
  0x86   :  { %2029 = vmatprep.mubr.bf16.mxu1 %v3464_v27 }
  0x87   :  { %2041 = vmatpush1.bf16.msra.mxu1 %v2920_v24  ;;  %v3008_v24 = vld [vmem:[%s4213_s1 + $0x5dc] ss:$24 sps:$4 sm:$0xff]  }
  0x88   :  { %2143 = vmatpush1.bf16.msra.mxu0 %v2923_v25  ;;  %2042 = vmatprep.subr.bf16.mxu1 %v2930_v26  ;;  %v3011_v25 = vld [vmem:[%s4213_s1 + $0x2e4] ss:$24 sps:$4 sm:$0xff]   ;;  %v3006_v26 = vld [vmem:[%s4213_s1 + $0x5d8] ss:$24 sps:$4 sm:$0xff]  }
  0x89   :  { %2144 = vmatprep.subr.bf16.mxu0 %v2933_v28  ;;  %v3009_v28 = vld [vmem:[%s4213_s1 + $0x2e0] ss:$24 sps:$4 sm:$0xff]  }
  0x8a   :  { %2030 = vmatmul.mubr.bf16.gmra.mrb[12].mxu1 %v3469_v29 }
  0x8b   :  { %1979 = vmatmul.mubr.bf16.gmra.mrb[4].mxu0 %v3656_v30  ;;  %2043 = vmatpush1.bf16.msra.mxu1 %v2928_v31  ;;  %v3014_v31 = vld [vmem:[%s4213_s1 + $0x60c] ss:$24 sps:$4 sm:$0xff]  }
  0x8c   :  { %2145 = vmatpush1.bf16.msra.mxu0 %v2931_v34  ;;  %2044 = vmatprep.subr.bf16.mxu1 %v2936_v35  ;;  %v3017_v34 = vld [vmem:[%s4213_s1 + $0x314] ss:$24 sps:$4 sm:$0xff]   ;;  %v3012_v35 = vld [vmem:[%s4213_s1 + $0x608] ss:$24 sps:$4 sm:$0xff]  }
  0x8d   :  { %2146 = vmatprep.subr.bf16.mxu0 %v2939_v36  ;;  %2070 = vmatprep.mubr.bf16.mxu1 %v3334_v50  ;;  %v2946_v50 = vld [vmem:[%s4213_s1 + $0x3f8] ss:$24 sps:$4 sm:$0xff]  }
  0x8e   :  { %2172 = vmatprep.mubr.bf16.mxu0 %v3329_v49  ;;  %v2951_v49 = vld [vmem:[%s4213_s1 + $0x104] ss:$24 sps:$4 sm:$0xff]   ;;  %v3015_v36 = vld [vmem:[%s4213_s1 + $0x310] ss:$24 sps:$4 sm:$0xff]  }
  0x8f   :  { %2045 = vmatpush1.bf16.msra.mxu1 %v2934_v37  ;;  %v3020_v37 = vld [vmem:[%s4213_s1 + $0x63c] ss:$24 sps:$4 sm:$0xff]  }
  0x90   :  { %2147 = vmatpush1.bf16.msra.mxu0 %v2937_v38  ;;  %2046 = vmatprep.subr.bf16.mxu1 %v2942_v39  ;;  %v3023_v38 = vld [vmem:[%s4213_s1 + $0x344] ss:$24 sps:$4 sm:$0xff]   ;;  %v3018_v39 = vld [vmem:[%s4213_s1 + $0x638] ss:$24 sps:$4 sm:$0xff]  }
  0x91   :  { %2148 = vmatprep.subr.bf16.mxu0 %v2945_v41  ;;  %v3021_v41 = vld [vmem:[%s4213_s1 + $0x340] ss:$24 sps:$4 sm:$0xff]  }
  0x93   :  { %2047 = vmatpush1.bf16.msra.mxu1 %v2940_v42  ;;  %v3026_v42 = vld [vmem:[%s4213_s1 + $0x66c] ss:$24 sps:$4 sm:$0xff]  }
  0x94   :  { %2149 = vmatpush1.bf16.msra.mxu0 %v2943_v43  ;;  %2048 = vmatprep.subr.bf16.mxu1 %v2948_v44  ;;  %v3027_v43 = vld [vmem:[%s4213_s1 + $0x370] ss:$24 sps:$4 sm:$0xff]   ;;  %v3032_v44 = vld [vmem:[%s4213_s1 + $0x69c] ss:$24 sps:$4 sm:$0xff]  }
  0x95   :  { %2150 = vmatprep.subr.bf16.mxu0 %v2951_v49  ;;  %v3030_v49 = vld [vmem:[%s4213_s1 + $0x698] ss:$24 sps:$4 sm:$0xff]  }
  0x97   :  { %2049 = vmatpush1.bf16.msra.mxu1 %v2946_v50  ;;  %v3033_v50 = vld [vmem:[%s4213_s1 + $0x3a0] ss:$24 sps:$4 sm:$0xff]  }
  0x98   :  { %2151 = vmatpush1.bf16.msra.mxu0 %v2949_v45  ;;  %2050 = vmatprep.subr.bf16.mxu1 %v2954_v46  ;;  %v3038_v45 = vld [vmem:[%s4213_s1 + $0x6cc] ss:$24 sps:$4 sm:$0xff]  }
  0x99   :  { %2152 = vmatprep.subr.bf16.mxu0 %v2957_v47  ;;  %v3156_v46 = vld [vmem:[%s4214_s0 + $0xc] ss:$24 sps:$4 sm:$0xff]   ;;  %v3036_v47 = vld [vmem:[%s4213_s1 + $0x6c8] ss:$24 sps:$4 sm:$0xff]  }
  0x9b   :  { %2051 = vmatpush1.bf16.msra.mxu1 %v2952_v48  ;;  %v3039_v48 = vld [vmem:[%s4213_s1 + $0x3d0] ss:$24 sps:$4 sm:$0xff]  }
  0x9c   :  { %2153 = vmatpush1.bf16.msra.mxu0 %v2955_v51  ;;  %2052 = vmatprep.subr.bf16.mxu1 %v2960_v52  ;;  %v3047_v51 = vld [vmem:[%s4213_s1 + $0x404] ss:$24 sps:$4 sm:$0xff]   ;;  %v3042_v52 = vld [vmem:[%s4213_s1 + $0x6f8] ss:$24 sps:$4 sm:$0xff]  }
  0x9d   :  { %2154 = vmatprep.subr.bf16.mxu0 %v2963_v53  ;;  %v3045_v53 = vld [vmem:[%s4213_s1 + $0x400] ss:$24 sps:$4 sm:$0xff]  }
  0x9f   :  { %2053 = vmatpush1.bf16.msra.mxu1 %v2958_v54  ;;  %v3050_v54 = vld [vmem:[%s4213_s1 + $0x72c] ss:$24 sps:$4 sm:$0xff]  }
  0xa0   :  { %2155 = vmatpush1.bf16.msra.mxu0 %v2961_v55  ;;  %2054 = vmatprep.subr.bf16.mxu1 %v2966_v56  ;;  %v3053_v55 = vld [vmem:[%s4213_s1 + $0x434] ss:$24 sps:$4 sm:$0xff]   ;;  %v3048_v56 = vld [vmem:[%s4213_s1 + $0x728] ss:$24 sps:$4 sm:$0xff]  }
  0xa1   :  { %2156 = vmatprep.subr.bf16.mxu0 %v2969_v57  ;;  %v3051_v57 = vld [vmem:[%s4213_s1 + $0x430] ss:$24 sps:$4 sm:$0xff]  }
  0xa3   :  { %2055 = vmatpush1.bf16.msra.mxu1 %v2964_v58  ;;  %v3056_v58 = vld [vmem:[%s4213_s1 + $0x75c] ss:$24 sps:$4 sm:$0xff]  }
  0xa4   :  { %2157 = vmatpush1.bf16.msra.mxu0 %v2967_v59  ;;  %2056 = vmatprep.subr.bf16.mxu1 %v2972_v60  ;;  %v3059_v59 = vld [vmem:[%s4213_s1 + $0x464] ss:$24 sps:$4 sm:$0xff]   ;;  %v3054_v60 = vld [vmem:[%s4213_s1 + $0x758] ss:$24 sps:$4 sm:$0xff]  }
  0xa5   :  { %2158 = vmatprep.subr.bf16.mxu0 %v2975_v61  ;;  %v3057_v61 = vld [vmem:[%s4213_s1 + $0x460] ss:$24 sps:$4 sm:$0xff]  }
  0xa7   :  { %2057 = vmatpush1.bf16.msra.mxu1 %v2970_v62  ;;  %v3062_v62 = vld [vmem:[%s4213_s1 + $0x78c] ss:$24 sps:$4 sm:$0xff]  }
  0xa8   :  { %2159 = vmatpush1.bf16.msra.mxu0 %v2973_v63  ;;  %2058 = vmatprep.subr.bf16.mxu1 %v2978_v0  ;;  %v3065_v63 = vld [vmem:[%s4213_s1 + $0x494] ss:$24 sps:$4 sm:$0xff]   ;;  %v3060_v0 = vld [vmem:[%s4213_s1 + $0x788] ss:$24 sps:$4 sm:$0xff]  }
  0xa9   :  { %2160 = vmatprep.subr.bf16.mxu0 %v2981_v1  ;;  %v3063_v1 = vld [vmem:[%s4213_s1 + $0x490] ss:$24 sps:$4 sm:$0xff]  }
  0xab   :  { %2059 = vmatpush1.bf16.msra.mxu1 %v2976_v2  ;;  %v3068_v2 = vld [vmem:[%s4213_s1 + $0x7bc] ss:$24 sps:$4 sm:$0xff]  }
  0xac   :  { %2161 = vmatpush1.bf16.msra.mxu0 %v2979_v3  ;;  %2060 = vmatprep.subr.bf16.mxu1 %v2984_v5  ;;  %v3071_v3 = vld [vmem:[%s4213_s1 + $0x4c4] ss:$24 sps:$4 sm:$0xff]   ;;  %v3066_v5 = vld [vmem:[%s4213_s1 + $0x7b8] ss:$24 sps:$4 sm:$0xff]  }
  0xad   :  { %2162 = vmatprep.subr.bf16.mxu0 %v2987_v6  ;;  %v3069_v6 = vld [vmem:[%s4213_s1 + $0x4c0] ss:$24 sps:$4 sm:$0xff]  }
  0xaf   :  { %2061 = vmatpush1.bf16.msra.mxu1 %v2982_v8  ;;  %v3074_v8 = vld [vmem:[%s4213_s1 + $0x7ec] ss:$24 sps:$4 sm:$0xff]  }
  0xb0   :  { %2163 = vmatpush1.bf16.msra.mxu0 %v2985_v9  ;;  %2062 = vmatprep.subr.bf16.mxu1 %v2990_v10  ;;  %v3077_v9 = vld [vmem:[%s4213_s1 + $0x4f4] ss:$24 sps:$4 sm:$0xff]   ;;  %v3072_v10 = vld [vmem:[%s4213_s1 + $0x7e8] ss:$24 sps:$4 sm:$0xff]  }
  0xb1   :  { %2164 = vmatprep.subr.bf16.mxu0 %v2993_v11  ;;  %v3075_v11 = vld [vmem:[%s4213_s1 + $0x4f0] ss:$24 sps:$4 sm:$0xff]  }
  0xb3   :  { %2063 = vmatpush1.bf16.msra.mxu1 %v2988_v12  ;;  %v3080_v12 = vld [vmem:[%s4213_s1 + $0x81c] ss:$24 sps:$4 sm:$0xff]  }
  0xb4   :  { %2165 = vmatpush1.bf16.msra.mxu0 %v2991_v13  ;;  %2064 = vmatprep.subr.bf16.mxu1 %v2996_v14  ;;  %v3083_v13 = vld [vmem:[%s4213_s1 + $0x524] ss:$24 sps:$4 sm:$0xff]   ;;  %v3078_v14 = vld [vmem:[%s4213_s1 + $0x818] ss:$24 sps:$4 sm:$0xff]  }
  0xb5   :  { %2166 = vmatprep.subr.bf16.mxu0 %v2999_v15  ;;  %v3081_v15 = vld [vmem:[%s4213_s1 + $0x520] ss:$24 sps:$4 sm:$0xff]  }
  0xb7   :  { %2065 = vmatpush1.bf16.msra.mxu1 %v2994_v16  ;;  %v3086_v16 = vld [vmem:[%s4213_s1 + $0x84c] ss:$24 sps:$4 sm:$0xff]  }
  0xb8   :  { %2167 = vmatpush1.bf16.msra.mxu0 %v2997_v18  ;;  %2066 = vmatprep.subr.bf16.mxu1 %v3002_v19  ;;  %v3089_v18 = vld [vmem:[%s4213_s1 + $0x554] ss:$24 sps:$4 sm:$0xff]   ;;  %v3084_v19 = vld [vmem:[%s4213_s1 + $0x848] ss:$24 sps:$4 sm:$0xff]  }
  0xb9   :  { %2168 = vmatprep.subr.bf16.mxu0 %v3005_v20  ;;  %v3087_v20 = vld [vmem:[%s4213_s1 + $0x550] ss:$24 sps:$4 sm:$0xff]  }
  0xbb   :  { %2067 = vmatpush1.bf16.msra.mxu1 %v3000_v21  ;;  %v3092_v21 = vld [vmem:[%s4213_s1 + $0x87c] ss:$24 sps:$4 sm:$0xff]  }
  0xbc   :  { %2169 = vmatpush1.bf16.msra.mxu0 %v3003_v22  ;;  %2068 = vmatprep.subr.bf16.mxu1 %v3008_v24  ;;  %v3095_v22 = vld [vmem:[%s4213_s1 + $0x584] ss:$24 sps:$4 sm:$0xff]   ;;  %v3090_v24 = vld [vmem:[%s4213_s1 + $0x878] ss:$24 sps:$4 sm:$0xff]  }
  0xbd   :  { %2170 = vmatprep.subr.bf16.mxu0 %v3011_v25  ;;  %v3093_v25 = vld [vmem:[%s4213_s1 + $0x580] ss:$24 sps:$4 sm:$0xff]  }
  0xbf   :  { %2069 = vmatpush1.bf16.msra.mxu1 %v3006_v26  ;;  %v3098_v26 = vld [vmem:[%s4213_s1 + $0x8ac] ss:$24 sps:$4 sm:$0xff]  }
  0xc0   :  { %2171 = vmatpush1.bf16.msra.mxu0 %v3009_v28  ;;  %2089 = vmatprep.subr.bf16.mxu1 %v3014_v31  ;;  %v3101_v28 = vld [vmem:[%s4213_s1 + $0x5b4] ss:$24 sps:$4 sm:$0xff]   ;;  %v3096_v31 = vld [vmem:[%s4213_s1 + $0x8a8] ss:$24 sps:$4 sm:$0xff]  }
  0xc1   :  { %2191 = vmatprep.subr.bf16.mxu0 %v3017_v34  ;;  %v3099_v34 = vld [vmem:[%s4213_s1 + $0x5b0] ss:$24 sps:$4 sm:$0xff]  }
  0xc2   :  { %2071 = vmatmul.mubr.bf16.vlgmr.msra.gmra.mrb[8].mxu1 %v3403_v7  ;;  %v3024_v7 = vld [vmem:[%s4213_s1 + $0x668] ss:$24 sps:$4 sm:$0xff]  }
  0xc3   :  { %2173 = vmatmul.mubr.bf16.vlgmr.msra.gmra.mrb[8].mxu0 %v3392_v4  ;;  %2090 = vmatpush1.bf16.msra.mxu1 %v3012_v35  ;;  %v3029_v4 = vld [vmem:[%s4213_s1 + $0x374] ss:$24 sps:$4 sm:$0xff]  }
  0xc4   :  { %2192 = vmatpush1.bf16.msra.mxu0 %v3015_v36  ;;  %2091 = vmatprep.subr.bf16.mxu1 %v3020_v37  ;;  %v3104_v35 = vld [vmem:[%s4213_s1 + $0x8dc] ss:$24 sps:$4 sm:$0xff]   ;;  %v3102_v37 = vld [vmem:[%s4213_s1 + $0x8d8] ss:$24 sps:$4 sm:$0xff]  }
  0xc5   :  { %2193 = vmatprep.subr.bf16.mxu0 %v3023_v38  ;;  %2080 = vmatprep.mubr.bf16.mxu1 %v3477_v32  ;;  %v3107_v36 = vld [vmem:[%s4213_s1 + $0x5e4] ss:$24 sps:$4 sm:$0xff]   ;;  %v3105_v38 = vld [vmem:[%s4213_s1 + $0x5e0] ss:$24 sps:$4 sm:$0xff]  }
  0xc6   :  { %2182 = vmatprep.mubr.bf16.mxu0 %v3464_v27  ;;  %v3035_v27 = vld [vmem:[%s4213_s1 + $0x3a4] ss:$24 sps:$4 sm:$0xff]  }
  0xc7   :  { %2092 = vmatpush1.bf16.msra.mxu1 %v3018_v39  ;;  %v3110_v39 = vld [vmem:[%s4213_s1 + $0x614] ss:$24 sps:$4 sm:$0xff]  }
  0xc8   :  { %2194 = vmatpush1.bf16.msra.mxu0 %v3021_v41  ;;  %2093 = vmatprep.subr.bf16.mxu1 %v3026_v42  ;;  %v3108_v41 = vld [vmem:[%s4213_s1 + $0x610] ss:$24 sps:$4 sm:$0xff]   ;;  %v3113_v42 = vld [vmem:[%s4213_s1 + $0x644] ss:$24 sps:$4 sm:$0xff]  }
  0xc9   :  { %2195 = vmatprep.subr.bf16.mxu0 %v3029_v4  ;;  %v3157_v4 = vld [vmem:[%s4214_s0 + $0x8] ss:$24 sps:$4 sm:$0xff]  }
  0xca   :  { %2081 = vmatmul.mubr.bf16.gmra.mrb[12].mxu1 %v3479_v33 }
  0xcb   :  { %2183 = vmatmul.mubr.bf16.gmra.mrb[12].mxu0 %v3469_v29  ;;  %2094 = vmatpush1.bf16.msra.mxu1 %v3024_v7  ;;  %v3041_v29 = vld [vmem:[%s4213_s1 + $0x3d4] ss:$24 sps:$4 sm:$0xff]   ;;  %v3111_v7 = vld [vmem:[%s4213_s1 + $0x640] ss:$24 sps:$4 sm:$0xff]  }
  0xcc   :  { %2196 = vmatpush1.bf16.msra.mxu0 %v3027_v43  ;;  %2095 = vmatprep.subr.bf16.mxu1 %v3032_v44  ;;  %v3116_v43 = vld [vmem:[%s4213_s1 + $0x674] ss:$24 sps:$4 sm:$0xff]   ;;  %v3114_v44 = vld [vmem:[%s4213_s1 + $0x670] ss:$24 sps:$4 sm:$0xff]  }
  0xcd   :  { %2197 = vmatprep.subr.bf16.mxu0 %v3035_v27  ;;  %2121 = vmatprep.mubr.bf16.mxu1 %v3506_v40  ;;  %v3044_v40 = vld [vmem:[%s4213_s1 + $0x6fc] ss:$24 sps:$4 sm:$0xff]  }
  0xce   :  { %2223 = vmatprep.mubr.bf16.mxu0 %v3156_v46  ;;  %v3119_v27 = vld [vmem:[%s4213_s1 + $0x6a4] ss:$24 sps:$4 sm:$0xff]  }
  0xcf   :  { %2096 = vmatpush1.bf16.msra.mxu1 %v3030_v49  ;;  %v3122_v49 = vld [vmem:[%s4213_s1 + $0x6d4] ss:$24 sps:$4 sm:$0xff]  }
  0xd0   :  { %2198 = vmatpush1.bf16.msra.mxu0 %v3033_v50  ;;  %2097 = vmatprep.subr.bf16.mxu1 %v3038_v45  ;;  %v3158_v50 = vld [vmem:[%s4214_s0 + $0x14] ss:$24 sps:$4 sm:$0xff]   ;;  %v3125_v45 = vld [vmem:[%s4213_s1 + $0x704] ss:$24 sps:$4 sm:$0xff]  }
  0xd1   :  { %2199 = vmatprep.subr.bf16.mxu0 %v3041_v29  ;;  %v3123_v29 = vld [vmem:[%s4213_s1 + $0x700] ss:$24 sps:$4 sm:$0xff]  }
  0xd3   :  { %2098 = vmatpush1.bf16.msra.mxu1 %v3036_v47 }
  0xd4   :  { %2200 = vmatpush1.bf16.msra.mxu0 %v3039_v48  ;;  %2099 = vmatprep.subr.bf16.mxu1 %v3044_v40  ;;  %v3126_v40 = vld [vmem:[%s4213_s1 + $0x730] ss:$24 sps:$4 sm:$0xff]  }
  0xd5   :  { %2201 = vmatprep.subr.bf16.mxu0 %v3047_v51 }
  0xd7   :  { %2100 = vmatpush1.bf16.msra.mxu1 %v3042_v52  ;;  %v3131_v52 = vld [vmem:[%s4213_s1 + $0x764] ss:$24 sps:$4 sm:$0xff]  }
  0xd8   :  { %2202 = vmatpush1.bf16.msra.mxu0 %v3045_v53  ;;  %2101 = vmatprep.subr.bf16.mxu1 %v3050_v54  ;;  %v3129_v53 = vld [vmem:[%s4213_s1 + $0x760] ss:$24 sps:$4 sm:$0xff]   ;;  %v3134_v54 = vld [vmem:[%s4213_s1 + $0x794] ss:$24 sps:$4 sm:$0xff]  }
  0xd9   :  { %2203 = vmatprep.subr.bf16.mxu0 %v3053_v55  ;;  %v3132_v55 = vld [vmem:[%s4213_s1 + $0x790] ss:$24 sps:$4 sm:$0xff]  }
  0xdb   :  { %2102 = vmatpush1.bf16.msra.mxu1 %v3048_v56  ;;  %v3137_v56 = vld [vmem:[%s4213_s1 + $0x7c4] ss:$24 sps:$4 sm:$0xff]  }
  0xdc   :  { %2204 = vmatpush1.bf16.msra.mxu0 %v3051_v57  ;;  %2103 = vmatprep.subr.bf16.mxu1 %v3056_v58  ;;  %v3135_v57 = vld [vmem:[%s4213_s1 + $0x7c0] ss:$24 sps:$4 sm:$0xff]   ;;  %v3140_v58 = vld [vmem:[%s4213_s1 + $0x7f4] ss:$24 sps:$4 sm:$0xff]  }
  0xdd   :  { %2205 = vmatprep.subr.bf16.mxu0 %v3059_v59  ;;  %v3138_v59 = vld [vmem:[%s4213_s1 + $0x7f0] ss:$24 sps:$4 sm:$0xff]  }
  0xdf   :  { %2104 = vmatpush1.bf16.msra.mxu1 %v3054_v60  ;;  %v3143_v60 = vld [vmem:[%s4213_s1 + $0x824] ss:$24 sps:$4 sm:$0xff]  }
  0xe0   :  { %2206 = vmatpush1.bf16.msra.mxu0 %v3057_v61  ;;  %2105 = vmatprep.subr.bf16.mxu1 %v3062_v62 }
  0xe1   :  { %2207 = vmatprep.subr.bf16.mxu0 %v3065_v63  ;;  %v3141_v63 = vld [vmem:[%s4213_s1 + $0x820] ss:$24 sps:$4 sm:$0xff]  }
  0xe3   :  { %2106 = vmatpush1.bf16.msra.mxu1 %v3060_v0 }
  0xe4   :  { %2208 = vmatpush1.bf16.msra.mxu0 %v3063_v1  ;;  %2107 = vmatprep.subr.bf16.mxu1 %v3068_v2  ;;  %v3146_v1 = vld [vmem:[%s4213_s1 + $0x854] ss:$24 sps:$4 sm:$0xff]  }
  0xe5   :  { %2209 = vmatprep.subr.bf16.mxu0 %v3071_v3  ;;  %v3144_v3 = vld [vmem:[%s4213_s1 + $0x850] ss:$24 sps:$4 sm:$0xff]  }
  0xe7   :  { %2108 = vmatpush1.bf16.msra.mxu1 %v3066_v5  ;;  %v3149_v5 = vld [vmem:[%s4213_s1 + $0x884] ss:$24 sps:$4 sm:$0xff]  }
  0xe8   :  { %2210 = vmatpush1.bf16.msra.mxu0 %v3069_v6  ;;  %2109 = vmatprep.subr.bf16.mxu1 %v3074_v8  ;;  %v3147_v6 = vld [vmem:[%s4213_s1 + $0x880] ss:$24 sps:$4 sm:$0xff]   ;;  %v3152_v8 = vld [vmem:[%s4213_s1 + $0x8b4] ss:$24 sps:$4 sm:$0xff]  }
  0xe9   :  { %2211 = vmatprep.subr.bf16.mxu0 %v3077_v9  ;;  %v3150_v9 = vld [vmem:[%s4213_s1 + $0x8b0] ss:$24 sps:$4 sm:$0xff]  }
  0xeb   :  { %2110 = vmatpush1.bf16.msra.mxu1 %v3072_v10  ;;  %v3155_v10 = vld [vmem:[%s4213_s1 + $0x8e4] ss:$24 sps:$4 sm:$0xff]  }
  0xec   :  { %2212 = vmatpush1.bf16.msra.mxu0 %v3075_v11  ;;  %2111 = vmatprep.subr.bf16.mxu1 %v3080_v12  ;;  %v3153_v11 = vld [vmem:[%s4213_s1 + $0x8e0] ss:$24 sps:$4 sm:$0xff]   ;;  %v313_v12 = vlaneseq }
  0xed   :  { %2213 = vmatprep.subr.bf16.mxu0 %v3083_v13 }
  0xee   :  { %v4144_v13 = vshrl.u32 %v313_v12, 7 }
  0xef   :  { %2112 = vmatpush1.bf16.msra.mxu1 %v3078_v14 }
  0xf0   :  { %2214 = vmatpush1.bf16.msra.mxu0 %v3081_v15  ;;  %2113 = vmatprep.subr.bf16.mxu1 %v3086_v16  ;;  %v315_v14 = vsub.s32 0, %v4144_v13  ;;  %v311_v15 = vld [vmem:[%s4215_s2] sm:$0x3f]  ;;  %v319_v16 = vsub.s32 1, %v4144_v13 }
  0xf1   :  { %2215 = vmatprep.subr.bf16.mxu0 %v3089_v18 }
  0xf2   :  { %v316_v18 = vrot.slane %v311_v15, %v315_v14 }
  0xf3   :  { %2114 = vmatpush1.bf16.msra.mxu1 %v3084_v19  ;;  %v320_v19 = vrot.slane %v311_v15, %v319_v16 }
  0xf4   :  { %2216 = vmatpush1.bf16.msra.mxu0 %v3087_v20  ;;  %2115 = vmatprep.subr.bf16.mxu1 %v3092_v21 }
  0xf5   :  { %2217 = vmatprep.subr.bf16.mxu0 %v3095_v22 }
  0xf7   :  { %2116 = vmatpush1.bf16.msra.mxu1 %v3090_v24 }
  0xf8   :  { %2218 = vmatpush1.bf16.msra.mxu0 %v3093_v25  ;;  %2117 = vmatprep.subr.bf16.mxu1 %v3098_v26 }
  0xf9   :  { %2219 = vmatprep.subr.bf16.mxu0 %v3101_v28 }
  0xfb   :  { %2118 = vmatpush1.bf16.msra.mxu1 %v3096_v31 }
  0xfc   :  { %2220 = vmatpush1.bf16.msra.mxu0 %v3099_v34  ;;  %2119 = vmatprep.subr.bf16.mxu1 %v3104_v35 }
  0xfd   :  { %2221 = vmatprep.subr.bf16.mxu0 %v3107_v36 }
  0xff   :  { %2120 = vmatpush1.bf16.msra.mxu1 %v3102_v37 }
 0x100   :  { %2222 = vmatpush1.bf16.msra.mxu0 %v3105_v38  ;;  %2615 = vmatprep.subr.bf16.mxu1 %v3110_v39 }
 0x101   :  { %2242 = vmatprep.subr.bf16.mxu0 %v3110_v39 }
 0x102   :  { %2122 = vmatmul.mubr.bf16.vlgmr.msra.gmra.mrb[8].mxu1 %v3621_v17 }
 0x103   :  { %2224 = vmatmul.mubr.bf16.vlgmr.msra.gmra.mrb[8].mxu0 %v3157_v4  ;;  %2631 = vmatpush1.bf16.msra.mxu1 %v3108_v41 }
 0x104   :  { %2243 = vmatpush1.bf16.msra.mxu0 %v3108_v41  ;;  %2616 = vmatprep.subr.bf16.mxu1 %v3113_v42 }
 0x105   :  { %2244 = vmatprep.subr.bf16.mxu0 %v3113_v42  ;;  %2131 = vmatprep.mubr.bf16.mxu1 %v3638_v23 }
 0x106   :  { %2233 = vmatprep.mubr.bf16.mxu0 %v3477_v32  ;;  %v3117_v32 = vld [vmem:[%s4213_s1 + $0x6a0] ss:$24 sps:$4 sm:$0xff]  }
 0x107   :  { %2632 = vmatpush1.bf16.msra.mxu1 %v3111_v7 }
 0x108   :  { %2245 = vmatpush1.bf16.msra.mxu0 %v3111_v7  ;;  %2617 = vmatprep.subr.bf16.mxu1 %v3116_v43 }
 0x109   :  { %2246 = vmatprep.subr.bf16.mxu0 %v3116_v43  ;;  %v323_v43 = vsub.s32 2, %v4144_v13 }
 0x10a   :  { %2132 = vmatmul.mubr.bf16.gmra.mrb[12].mxu1 %v3656_v30 }
 0x10b   :  { %2234 = vmatmul.mubr.bf16.gmra.mrb[12].mxu0 %v3479_v33  ;;  %2633 = vmatpush1.bf16.msra.mxu1 %v3114_v44  ;;  %v3120_v33 = vld [vmem:[%s4213_s1 + $0x6d0] ss:$24 sps:$4 sm:$0xff]  }
 0x10c   :  { %2247 = vmatpush1.bf16.msra.mxu0 %v3114_v44  ;;  %2618 = vmatprep.subr.bf16.mxu1 %v3119_v27  ;;  %v327_v44 = vsub.s32 3, %v4144_v13 }
 0x10d   :  { %2248 = vmatprep.subr.bf16.mxu0 %v3119_v27  ;;  %2274 = vmatprep.mubr.bf16.mxu0 %v3158_v50  ;;  %v324_v27 = vrot.slane %v311_v15, %v323_v43 }
 0x10e   :  { %2284 = vmatprep.mubr.bf16.mxu1 %v3638_v23  ;;  %v3128_v23 = vld [vmem:[%s4213_s1 + $0x734] ss:$24 sps:$4 sm:$0xff]  }
 0x10f   :  { %2634 = vmatpush1.bf16.msra.mxu1 %v3117_v32 }
 0x110   :  { %2249 = vmatpush1.bf16.msra.mxu0 %v3117_v32  ;;  %2619 = vmatprep.subr.bf16.mxu1 %v3122_v49  ;;  %v328_v32 = vrot.slane %v311_v15, %v327_v44 }
 0x111   :  { %2250 = vmatprep.subr.bf16.mxu0 %v3122_v49 }
 0x113   :  { %2635 = vmatpush1.bf16.msra.mxu1 %v3120_v33 }
 0x114   :  { %2251 = vmatpush1.bf16.msra.mxu0 %v3120_v33  ;;  %2620 = vmatprep.subr.bf16.mxu1 %v3125_v45 }
 0x115   :  { %2252 = vmatprep.subr.bf16.mxu0 %v3125_v45  ;;  %v4077_v46 = vpop.f32.mrb[0].mxu1 }
 0x116   :  { %v4079_v47 = vpop.f32.mrb[1].mxu1  ;;  %v1869_v20 = vadd.f32 %v4077_v46, %v316_v18 }
 0x117   :  { %v4081_v48 = vpop.f32.mrb[2].mxu1  ;;  %2636 = vmatpush1.bf16.msra.mxu1 %v3123_v29  ;;  %v1871_v21 = vadd.f32 %v4079_v47, %v320_v19 }
 0x118   :  { %2253 = vmatpush1.bf16.msra.mxu0 %v3123_v29  ;;  %v4086_v51 = vpop.f32.mrb[3].mxu1  ;;  %2621 = vmatprep.subr.bf16.mxu1 %v3128_v23 }
 0x119   :  { %2254 = vmatprep.subr.bf16.mxu0 %v3128_v23  ;;  %v1875_v25 = vadd.f32 %v4086_v51, %v320_v19 }
 0x11b   :  { %2637 = vmatpush1.bf16.msra.mxu1 %v3126_v40 }
 0x11c   :  { %2255 = vmatpush1.bf16.msra.mxu0 %v3126_v40  ;;  %2622 = vmatprep.subr.bf16.mxu1 %v3131_v52 }
 0x11d   :  { %2256 = vmatprep.subr.bf16.mxu0 %v3131_v52  ;;  %v1878_v61 = vpop.f32.mrb[4].mxu1 }
 0x11e   :  { %v1880_v62 = vpop.f32.mrb[5].mxu1  ;;  %v1879_v36 = vadd.f32 %v1878_v61, %v316_v18 }
 0x11f   :  { %2638 = vmatpush1.bf16.msra.mxu1 %v3129_v53  ;;  %v1882_v0 = vpop.f32.mrb[6].mxu1  ;;  %v1881_v37 = vadd.f32 %v1880_v62, %v320_v19 }
 0x120   :  { %2257 = vmatpush1.bf16.msra.mxu0 %v3129_v53  ;;  %2623 = vmatprep.subr.bf16.mxu1 %v3134_v54  ;;  %v1883_v2 = vpop.f32.mrb[7].mxu1 }
 0x121   :  { %2258 = vmatprep.subr.bf16.mxu0 %v3134_v54 }
 0x123   :  { %2639 = vmatpush1.bf16.msra.mxu1 %v3132_v55 }
 0x124   :  { %2259 = vmatpush1.bf16.msra.mxu0 %v3132_v55  ;;  %2624 = vmatprep.subr.bf16.mxu1 %v3137_v56 }
 0x125   :  { %2260 = vmatprep.subr.bf16.mxu0 %v3137_v56 }
 0x127   :  { %2640 = vmatpush1.bf16.msra.mxu1 %v3135_v57 }
 0x128   :  { %2261 = vmatpush1.bf16.msra.mxu0 %v3135_v57  ;;  %2625 = vmatprep.subr.bf16.mxu1 %v3140_v58 }
 0x129   :  { %2262 = vmatprep.subr.bf16.mxu0 %v3140_v58 }
 0x12b   :  { %2641 = vmatpush1.bf16.msra.mxu1 %v3138_v59 }
 0x12c   :  { %2263 = vmatpush1.bf16.msra.mxu0 %v3138_v59  ;;  %2626 = vmatprep.subr.bf16.mxu1 %v3143_v60  ;;  %v331_v59 = vsub.s32 4, %v4144_v13 }
 0x12d   :  { %2264 = vmatprep.subr.bf16.mxu0 %v3143_v60  ;;  %v335_v60 = vsub.s32 5, %v4144_v13 }
 0x12e   :  { %v332_v61 = vrot.slane %v311_v15, %v331_v59 }
 0x12f   :  { %2642 = vmatpush1.bf16.msra.mxu1 %v3141_v63  ;;  %v336_v62 = vrot.slane %v311_v15, %v335_v60 }
 0x130   :  { %2265 = vmatpush1.bf16.msra.mxu0 %v3141_v63  ;;  %2627 = vmatprep.subr.bf16.mxu1 %v3146_v1 }
 0x131   :  { %2266 = vmatprep.subr.bf16.mxu0 %v3146_v1 }
 0x133   :  { %2643 = vmatpush1.bf16.msra.mxu1 %v3144_v3 }
 0x134   :  { %2267 = vmatpush1.bf16.msra.mxu0 %v3144_v3  ;;  %2628 = vmatprep.subr.bf16.mxu1 %v3149_v5 }
 0x135   :  { %2268 = vmatprep.subr.bf16.mxu0 %v3149_v5 }
 0x137   :  { %2644 = vmatpush1.bf16.msra.mxu1 %v3147_v6 }
 0x138   :  { %2269 = vmatpush1.bf16.msra.mxu0 %v3147_v6  ;;  %2629 = vmatprep.subr.bf16.mxu1 %v3152_v8 }
 0x139   :  { %2270 = vmatprep.subr.bf16.mxu0 %v3152_v8 }
 0x13b   :  { %2645 = vmatpush1.bf16.msra.mxu1 %v3150_v9 }
 0x13c   :  { %2271 = vmatpush1.bf16.msra.mxu0 %v3150_v9  ;;  %2630 = vmatprep.subr.bf16.mxu1 %v3155_v10 }
 0x13d   :  { %2272 = vmatprep.subr.bf16.mxu0 %v3155_v10 }
 0x13f   :  { %2646 = vmatpush1.bf16.msra.mxu1 %v3153_v11 }
 0x140   :  { %2273 = vmatpush1.bf16.msra.mxu0 %v3153_v11 }
 0x142   :  { %2285 = vmatmul.mubr.bf16.vlgmr.msra.gmra.mrb[16].mxu1 %v3656_v30  ;;  %v1873_v30 = vadd.f32 %v4081_v48, %v316_v18 }
 0x143   :  { %2275 = vmatmul.mubr.bf16.vlgmr.msra.gmra.mrb[8].mxu0 %v3621_v17 }
 0x156   :  { %v1970_v17 = vpop.f32.mrb[0].mxu0 }
 0x157   :  { %v2648_v22 = vadd.f32 %v1970_v17, %v1869_v20  ;;  %v1972_v24 = vpop.f32.mrb[1].mxu0 }
 0x158   :  { %v2650_v26 = vadd.f32 %v1972_v24, %v1871_v21  ;;  %v1974_v28 = vpop.f32.mrb[2].mxu0 }
 0x159   :  { %2293 = vst [vmem:[%s4216_s3] sm:$0xff] %v2648_v22  ;;  %v2652_v31 = vadd.f32 %v1974_v28, %v1873_v30  ;;  %v1976_v34 = vpop.f32.mrb[3].mxu0 }
 0x15a   :  { %2294 = vst [vmem:[%s4216_s3 + $0x8] sm:$0xff] %v2650_v26  ;;  %v2654_v35 = vadd.f32 %v1976_v34, %v1875_v25 }
 0x15b   :  { %2299 = vst [vmem:[%s4216_s3 + $0x30] sm:$0xff] %v2652_v31 }
 0x15c   :  { %2300 = vst [vmem:[%s4216_s3 + $0x38] sm:$0xff] %v2654_v35 }
 0x15e   :  { %v1980_v38 = vpop.f32.mrb[4].mxu0 }
 0x15f   :  { %v2656_v39 = vadd.f32 %v1980_v38, %v1879_v36  ;;  %v1982_v41 = vpop.f32.mrb[5].mxu0 }
 0x160   :  { %v2658_v42 = vadd.f32 %v1982_v41, %v1881_v37  ;;  %v1984_v4 = vpop.f32.mrb[6].mxu0 }
 0x161   :  { %2305 = vst [vmem:[%s4216_s3 + $0x60] sm:$0xff] %v2656_v39  ;;  %v1985_v7 = vpop.f32.mrb[7].mxu0 }
 0x162   :  { %2306 = vst [vmem:[%s4216_s3 + $0x68] sm:$0xff] %v2658_v42 }
 0x1d5   :  { %v2123_v49 = vpop.f32.mrb[8].mxu1 }
 0x1d6   :  { %v2659_v50 = vadd.f32 %v2123_v49, %v324_v27  ;;  %v2125_v33 = vpop.f32.mrb[9].mxu1 }
 0x1d7   :  { %v2660_v45 = vadd.f32 %v2125_v33, %v328_v32  ;;  %v2127_v29 = vpop.f32.mrb[10].mxu1 }
 0x1d8   :  { %2295 = vst [vmem:[%s4216_s3 + $0x10] sm:$0xff] %v2659_v50  ;;  %v2661_v23 = vadd.f32 %v2127_v29, %v324_v27  ;;  %v2129_v46 = vpop.f32.mrb[11].mxu1 }
 0x1d9   :  { %2296 = vst [vmem:[%s4216_s3 + $0x18] sm:$0xff] %v2660_v45  ;;  %v2662_v47 = vadd.f32 %v2129_v46, %v328_v32 }
 0x1da   :  { %2301 = vst [vmem:[%s4216_s3 + $0x40] sm:$0xff] %v2661_v23 }
 0x1db   :  { %2302 = vst [vmem:[%s4216_s3 + $0x48] sm:$0xff] %v2662_v47 }
 0x1dd   :  { %v2133_v48 = vpop.f32.mrb[12].mxu1 }
 0x1de   :  { %v2235_v40 = vpop.f32.mrb[12].mxu0  ;;  %v2663_v51 = vadd.f32 %v2133_v48, %v324_v27  ;;  %v2135_v52 = vpop.f32.mrb[13].mxu1 }
 0x1df   :  { %v2237_v53 = vpop.f32.mrb[13].mxu0  ;;  %v2664_v54 = vadd.f32 %v2135_v52, %v328_v32  ;;  %v2137_v55 = vpop.f32.mrb[14].mxu1  ;;  %v2669_v63 = vadd.f32 %v2235_v40, %v332_v61 }
 0x1e0   :  { %v2239_v56 = vpop.f32.mrb[14].mxu0  ;;  %2307 = vst [vmem:[%s4216_s3 + $0x70] sm:$0xff] %v2663_v51  ;;  %v2138_v57 = vpop.f32.mrb[15].mxu1  ;;  %v2671_v0 = vadd.f32 %v2237_v53, %v336_v62 }
 0x1e1   :  { %v2240_v58 = vpop.f32.mrb[15].mxu0  ;;  %2308 = vst [vmem:[%s4216_s3 + $0x78] sm:$0xff] %v2664_v54 }
 0x215   :  { %v2286_v2 = vpop.f32.mrb[16].mxu1 }
 0x216   :  { %v2276_v1 = vpop.f32.mrb[8].mxu0  ;;  %v2670_v5 = vadd.f32 %v2669_v63, %v2286_v2  ;;  %v2288_v8 = vpop.f32.mrb[17].mxu1 }
 0x217   :  { %v2665_v3 = vadd.f32 %v2276_v1, %v332_v61  ;;  %v2278_v6 = vpop.f32.mrb[9].mxu0  ;;  %v2672_v10 = vadd.f32 %v2671_v0, %v2288_v8  ;;  %v2290_v12 = vpop.f32.mrb[18].mxu1 }
 0x218   :  { %v2666_v9 = vadd.f32 %v2278_v6, %v336_v62  ;;  %v2280_v11 = vpop.f32.mrb[10].mxu0  ;;  %2309 = vst [vmem:[%s4216_s3 + $0x80] sm:$0xff] %v2670_v5  ;;  %v2291_v15 = vpop.f32.mrb[19].mxu1 }
 0x219   :  { %2297 = vst [vmem:[%s4216_s3 + $0x20] sm:$0xff] %v2665_v3  ;;  %v2667_v13 = vadd.f32 %v2280_v11, %v332_v61  ;;  %v2282_v14 = vpop.f32.mrb[11].mxu0  ;;  %2310 = vst [vmem:[%s4216_s3 + $0x88] sm:$0xff] %v2672_v10 }
 0x21a   :  { %2298 = vst [vmem:[%s4216_s3 + $0x28] sm:$0xff] %v2666_v9  ;;  %v2668_v16 = vadd.f32 %v2282_v14, %v336_v62 }
 0x21b   :  { %2303 = vst [vmem:[%s4216_s3 + $0x50] sm:$0xff] %v2667_v13 }
 0x21c   :  { %2304 = vst [vmem:[%s4216_s3 + $0x58] sm:$0xff] %v2668_v16 }

</bundles_post_ra>
